<compile_context>
chip_gen: v7x
topology: tpu7x:2x2x1
jax: 0.10.0
libtpu: 0.0.40
codegen_flags: <defaults>
</compile_context>

<pallas_src>
import math
import functools

import jax
import jax.numpy as jnp
from jax import lax
from jax.experimental import pallas as pl
from jax.experimental.pallas import tpu as pltpu


def mha_kernel(x_ref, wqkv_ref, bqkv_ref, wp_ref, bp_ref, o_ref, qkv_ref, *,
               num_heads: int, emb_size: int, seq_len: int, batch_block: int,
               compute_dtype, approx_recip: bool):
    """One grid step handles `batch_block` batch elements.

    x_ref:    (Bb, N, E)   compute_dtype
    wqkv_ref: (E, 3E)      compute_dtype (1/sqrt(E) pre-folded into Q columns)
    bqkv_ref: (1, 3E)      f32           (1/sqrt(E) pre-folded into Q bias)
    wp_ref:   (E, E)       compute_dtype
    bp_ref:   (1, E)       f32
    o_ref:    (Bb, N*E)    f32           (lane-dense output slab)
    qkv_ref:  (Bb*N, 3E)   f32 VMEM scratch
    """
    E, H, N, Bb = emb_size, num_heads, seq_len, batch_block
    D = E // H
    cd = compute_dtype

    # Fused QKV projection: ONE MXU matmul per grid step, staged into VMEM
    # scratch so the big f32 intermediate is not a live vreg value across the
    # (unrolled) per-batch / per-head loops.
    x = x_ref[...].reshape(Bb * N, E)                       # leading-dim merge: free
    qkv_ref[...] = jnp.dot(x, wqkv_ref[...],
                           preferred_element_type=jnp.float32) + bqkv_ref[...]

    wp = wp_ref[...]                                        # (E, E)
    bp = bp_ref[...]                                        # (1, E) f32

    # NOTE: batch_block and num_heads are small here, so static unrolling is
    # fine; at real sizes move `b` onto the grid and the head loop into a
    # lax.fori_loop (and tile softmax over K flash-style).
    # TODO(synk): flash-style K tiling of the softmax for large seq_len.
    head_cat = []                                           # per-b (N, E) f32
    for b in range(Bb):
        r0 = b * N
        heads = []
        for h in range(H):
            c0 = h * D
            qh = qkv_ref[r0:r0 + N, c0:c0 + D].astype(cd)            # (N, D)
            kh = qkv_ref[r0:r0 + N, E + c0:E + c0 + D].astype(cd)    # (N, D)
            vh = qkv_ref[r0:r0 + N, 2 * E + c0:2 * E + c0 + D].astype(cd)

            # energy = einsum('qd,kd->qk'); no kh.T materialized.  The
            # 1/sqrt(emb_size) scaling is already folded into Q (weight-side).
            energy = lax.dot_general(
                qh, kh, (((1,), (1,)), ((), ())),
                preferred_element_type=jnp.float32)                   # (N, N) f32

            # Numerically stable softmax, f32 on all chips.
            m = jnp.max(energy, axis=-1, keepdims=True)
            e = jnp.exp(energy - m)
            denom = jnp.sum(e, axis=-1, keepdims=True)
            att = e * pl.reciprocal(denom, approx=approx_recip)

            # att_drop: nn.Dropout is identity in eval mode (no-op here).
            heads.append(jnp.dot(att.astype(cd), vh,
                                 preferred_element_type=jnp.float32))  # (N, D)

        # 'b h n d -> b n (h d)': lane concat (XLU slot, otherwise idle) --
        # replaces the former H shallow K=D output-projection matmuls.
        head_cat.append(jnp.concatenate(heads, axis=-1))               # (N, E)

    # ONE output-projection matmul (K = E) for the whole batch block.
    hcat = jnp.concatenate(head_cat, axis=0).astype(cd)                # (Bb*N, E)
    proj = jnp.dot(hcat, wp, preferred_element_type=jnp.float32) + bp  # (Bb*N, E)

    # Lane-dense output slab: (Bb, N*E) with N*E a multiple of 128 -> a single
    # unmasked store per grid step (instead of per-batch 32-lane vst.msk).
    rows = []
    for b in range(Bb):
        r0 = b * N
        rows.append(jnp.concatenate(
            [proj[r0 + n:r0 + n + 1, :] for n in range(N)], axis=1))   # (1, N*E)
    o_ref[...] = jnp.concatenate(rows, axis=0)                          # (Bb, N*E)

    # TODO(synk): optional attention `mask` path (masked_fill) not implemented;
    # the reference forward is only exercised with mask=None.


def fuse_mha_params(params, *, compute_dtype=jnp.bfloat16):
    """One-time parameter preprocessing (hoisted out of the forward pass).

    * Fuses Q/K/V into a single (E, 3E) weight / (1, 3E) bias.
    * Folds the 1/sqrt(emb_size) attention scaling into the Q weight + bias.
      (The PyTorch module scales by sqrt(emb_size), NOT sqrt(head_dim).)
    * Casts MXU weight operands to `compute_dtype`; biases stay f32.
    """
    E = params["wq"].shape[0]
    inv_scale = 1.0 / math.sqrt(float(E))
    wq = params["wq"] * inv_scale
    bq = params["bq"] * inv_scale
    wqkv = jnp.concatenate([wq, params["wk"], params["wv"]], axis=1)          # (E, 3E)
    bqkv = jnp.concatenate([bq, params["bk"], params["bv"]]).reshape(1, 3 * E)
    return dict(
        wqkv=wqkv.astype(compute_dtype),
        bqkv=bqkv.astype(jnp.float32),
        wp=params["wp"].astype(compute_dtype),
        bp=params["bp"].reshape(1, E).astype(jnp.float32),
        compute_dtype=compute_dtype,
    )


def multi_head_attention(x, fused, *, num_heads: int,
                         approx_recip: bool = False,
                         batch_block=None):
    """x: (B, N, E) float32.  `fused` comes from fuse_mha_params()."""
    B, N, E = x.shape
    assert E % num_heads == 0, "emb_size must be divisible by num_heads"
    cd = fused["compute_dtype"]

    if batch_block is None:
        # grid=1 by default: v5e/v6e are single-TC (splitting only adds per-step
        # overhead), and on v7x a 2-TC split only pays off once per-step work is
        # at least a few microseconds (then prefer >=4 steps so each core still
        # double-buffers its DMA).
        batch_block = B
    assert B % batch_block == 0
    grid = B // batch_block

    # Derive the VMEM budget from tile bytes instead of hard-coding it; only
    # raise the limit when the double-buffered tiles actually need it, and keep
    # headroom under v7x's 64 MiB physical VMEM.
    cd_bytes = jnp.dtype(cd).itemsize
    x_tile = batch_block * N * E * cd_bytes
    o_tile = batch_block * N * E * 4
    w_bytes = (E * 3 * E + E * E) * cd_bytes + (3 * E + E) * 4
    scratch_bytes = batch_block * N * 3 * E * 4
    est = 2 * (x_tile + o_tile) + w_bytes + scratch_bytes
    vmem_limit = None
    if est > 32 * 1024 * 1024:
        vmem_limit = min(int(est * 1.25), 60 * 1024 * 1024)

    kernel = functools.partial(
        mha_kernel, num_heads=num_heads, emb_size=E, seq_len=N,
        batch_block=batch_block, compute_dtype=cd, approx_recip=approx_recip)

    out_flat = pl.pallas_call(
        kernel,
        out_shape=jax.ShapeDtypeStruct((B, N * E), jnp.float32),
        grid_spec=pltpu.PrefetchScalarGridSpec(
            num_scalar_prefetch=0,
            grid=(grid,),
            in_specs=[
                pl.BlockSpec((batch_block, N, E), lambda g: (g, 0, 0)),   # x
                pl.BlockSpec((E, 3 * E), lambda g: (0, 0)),               # wqkv
                pl.BlockSpec((1, 3 * E), lambda g: (0, 0)),               # bqkv
                pl.BlockSpec((E, E), lambda g: (0, 0)),                   # wp
                pl.BlockSpec((1, E), lambda g: (0, 0)),                   # bp
            ],
            out_specs=pl.BlockSpec((batch_block, N * E), lambda g: (g, 0)),
            scratch_shapes=[pltpu.VMEM((batch_block * N, 3 * E), jnp.float32)],
        ),
        compiler_params=pltpu.CompilerParams(
            dimension_semantics=("parallel",),
            vmem_limit_bytes=vmem_limit,
        ),
    )(x.astype(cd), fused["wqkv"], fused["bqkv"], fused["wp"], fused["bp"])

    # (B, N*E) -> (B, N, E): free (row-major identity) in the wrapper.
    return out_flat.reshape(B, N, E)


def _init_linear(key, in_f, out_f):
    """Deterministic torch.nn.Linear-style init; weight returned as (in, out)."""
    kw, kb = jax.random.split(key)
    bound = 1.0 / math.sqrt(in_f)
    w = jax.random.uniform(kw, (in_f, out_f), jnp.float32, -bound, bound)
    b = jax.random.uniform(kb, (out_f,), jnp.float32, -bound, bound)
    return w, b


def _reference(x, params, num_heads):
    """Pure-JAX reference mirroring the PyTorch forward (eval mode, mask=None)."""
    B, N, E = x.shape
    D = E // num_heads

    def lin(t, w, b):
        return t @ w + b

    def split(t):  # b n (h d) -> b h n d
        return t.reshape(B, N, num_heads, D).transpose(0, 2, 1, 3)

    q = split(lin(x, params["wq"], params["bq"]))
    k = split(lin(x, params["wk"], params["bk"]))
    v = split(lin(x, params["wv"], params["bv"]))
    energy = jnp.einsum("bhqd,bhkd->bhqk", q, k)
    att = jax.nn.softmax(energy / math.sqrt(E), axis=-1)
    out = jnp.einsum("bhal,bhlv->bhav", att, v)
    out = out.transpose(0, 2, 1, 3).reshape(B, N, E)
    return lin(out, params["wp"], params["bp"])


if __name__ == "__main__":
    B, N, E, H = 2, 8, 32, 4   # batch, seq, emb_size, num_heads (dropout eval => no-op)

    key = jax.random.PRNGKey(0)
    kx, kq, kk, kv, kp = jax.random.split(key, 5)

    x = jax.random.normal(kx, (B, N, E), jnp.float32)

    wq, bq = _init_linear(kq, E, E)
    wk, bk = _init_linear(kk, E, E)
    wv, bv = _init_linear(kv, E, E)
    wp, bp = _init_linear(kp, E, E)
    params = dict(wq=wq, bq=bq, wk=wk, bk=bk, wv=wv, bv=bv, wp=wp, bp=bp)

    ref = _reference(x, params, H)

    # Exact-math config (f32 MXU operands, exact reciprocal): strict check.
    fused_f32 = fuse_mha_params(params, compute_dtype=jnp.float32)
    out = multi_head_attention(x, fused_f32, num_heads=H, approx_recip=False)
    out = jax.block_until_ready(out)
    assert out.shape == (B, N, E)
    assert jnp.allclose(out, ref, atol=1e-4, rtol=1e-4), "mismatch vs JAX reference (f32)"

    # Performance config (bf16 MXU operands + approx EUP reciprocal): loose check.
    fused_bf16 = fuse_mha_params(params, compute_dtype=jnp.bfloat16)
    out_fast = multi_head_attention(x, fused_bf16, num_heads=H, approx_recip=True)
    out_fast = jax.block_until_ready(out_fast)
    assert jnp.allclose(out_fast, ref, atol=1e-1, rtol=1e-1), "mismatch vs JAX reference (bf16)"

    print("KERNEL_OK")
</pallas_src>

<mosaic_0001>
module attributes {stable_mosaic.version = 11 : i64} {
  func.func @mha_kernel(%arg0: i32, %arg1: memref<2x8x32xf32, #tpu.memory_space<vmem>>, %arg2: memref<32x96xf32, #tpu.memory_space<vmem>>, %arg3: memref<1x96xf32, #tpu.memory_space<vmem>>, %arg4: memref<32x32xf32, #tpu.memory_space<vmem>>, %arg5: memref<1x32xf32, #tpu.memory_space<vmem>>, %arg6: memref<2x256xf32, #tpu.memory_space<vmem>>, %arg7: memref<16x96xf32, #tpu.memory_space<vmem>>) attributes {dimension_semantics = [#tpu.dimension_semantics<parallel>], iteration_bounds = array<i64: 1>, scalar_prefetch = 0 : i64, scratch_operands = 1 : i64, tpu.core_type = #tpu.core_type<tc>, window_params = [{transform_indices = @transform_0, window_bounds = array<i64: 2, 8, 32>}, {pipeline_mode = #tpu.pipeline_mode<synchronous>, transform_indices = @transform_1, window_bounds = array<i64: 32, 96>}, {pipeline_mode = #tpu.pipeline_mode<synchronous>, transform_indices = @transform_2, window_bounds = array<i64: 1, 96>}, {pipeline_mode = #tpu.pipeline_mode<synchronous>, transform_indices = @transform_3, window_bounds = array<i64: 32, 32>}, {pipeline_mode = #tpu.pipeline_mode<synchronous>, transform_indices = @transform_4, window_bounds = array<i64: 1, 32>}, {transform_indices = @transform_5, window_bounds = array<i64: 2, 256>}]} {
    %c0 = arith.constant 0 : index
    %c0_0 = arith.constant 0 : index
    %c0_1 = arith.constant 0 : index
    %0 = vector.load %arg1[%c0, %c0_0, %c0_1] : memref<2x8x32xf32, #tpu.memory_space<vmem>>, vector<2x8x32xf32>
    %1 = vector.shape_cast %0 : vector<2x8x32xf32> to vector<16x32xf32>
    %c0_2 = arith.constant 0 : index
    %c0_3 = arith.constant 0 : index
    %2 = vector.load %arg2[%c0_2, %c0_3] : memref<32x96xf32, #tpu.memory_space<vmem>>, vector<32x96xf32>
    %cst = arith.constant dense<0.000000e+00> : vector<16x96xf32>
    %3 = tpu.matmul %1, %2, %cst {dimension_numbers = #tpu.dot_dimension_numbers<[1], [0], [0], [1], [0, 0, 1, 1], [], []>} : vector<16x32xf32>, vector<32x96xf32>, vector<16x96xf32> -> vector<16x96xf32>
    %c0_4 = arith.constant 0 : index
    %c0_5 = arith.constant 0 : index
    %4 = vector.load %arg3[%c0_4, %c0_5] : memref<1x96xf32, #tpu.memory_space<vmem>>, vector<1x96xf32>
    %5 = vector.broadcast %4 : vector<1x96xf32> to vector<16x96xf32>
    %6 = arith.addf %3, %5 : vector<16x96xf32>
    %c0_6 = arith.constant 0 : index
    %c0_7 = arith.constant 0 : index
    %7 = vector.load %arg7[%c0_6, %c0_7] : memref<16x96xf32, #tpu.memory_space<vmem>>, vector<16x96xf32>
    tpu.vector_store %arg7[%c0_6, %c0_7], %6 {strides = array<i32>} : memref<16x96xf32, #tpu.memory_space<vmem>>, vector<16x96xf32>,
    %c0_8 = arith.constant 0 : index
    %c0_9 = arith.constant 0 : index
    %8 = vector.load %arg4[%c0_8, %c0_9] : memref<32x32xf32, #tpu.memory_space<vmem>>, vector<32x32xf32>
    %c0_10 = arith.constant 0 : index
    %c0_11 = arith.constant 0 : index
    %9 = vector.load %arg5[%c0_10, %c0_11] : memref<1x32xf32, #tpu.memory_space<vmem>>, vector<1x32xf32>
    %c0_12 = arith.constant 0 : index
    %c0_13 = arith.constant 0 : index
    %10 = vector.load %arg7[%c0_12, %c0_13] : memref<16x96xf32, #tpu.memory_space<vmem>>, vector<8x8xf32>
    %c0_14 = arith.constant 0 : index
    %c32 = arith.constant 32 : index
    %11 = vector.load %arg7[%c0_14, %c32] : memref<16x96xf32, #tpu.memory_space<vmem>>, vector<8x8xf32>
    %c0_15 = arith.constant 0 : index
    %c64 = arith.constant 64 : index
    %12 = vector.load %arg7[%c0_15, %c64] : memref<16x96xf32, #tpu.memory_space<vmem>>, vector<8x8xf32>
    %cst_16 = arith.constant dense<0.000000e+00> : vector<8x8xf32>
    %13 = tpu.matmul %10, %11, %cst_16 {dimension_numbers = #tpu.dot_dimension_numbers<[1], [1], [0], [0], [0, 0, 1, 0], [], []>} : vector<8x8xf32>, vector<8x8xf32>, vector<8x8xf32> -> vector<8x8xf32>
    %cst_17 = arith.constant dense<0xFF800000> : vector<8xf32>
    %14 = vector.multi_reduction <maximumf>, %13, %cst_17 [1] : vector<8x8xf32> to vector<8xf32>
    %15 = vector.shape_cast %14 : vector<8xf32> to vector<8x1xf32>
    %16 = vector.broadcast %15 : vector<8x1xf32> to vector<8x8xf32>
    %17 = arith.subf %13, %16 : vector<8x8xf32>
    %18 = math.exp %17 : vector<8x8xf32>
    %cst_18 = arith.constant dense<0.000000e+00> : vector<8xf32>
    %19 = vector.multi_reduction <add>, %18, %cst_18 [1] : vector<8x8xf32> to vector<8xf32>
    %20 = vector.shape_cast %19 : vector<8xf32> to vector<8x1xf32>
    %21 = tpu.reciprocal %20 : vector<8x1xf32> -> vector<8x1xf32>
    %22 = vector.broadcast %21 : vector<8x1xf32> to vector<8x8xf32>
    %23 = arith.mulf %18, %22 : vector<8x8xf32>
    %cst_19 = arith.constant dense<0.000000e+00> : vector<8x8xf32>
    %24 = tpu.matmul %23, %12, %cst_19 {dimension_numbers = #tpu.dot_dimension_numbers<[1], [0], [0], [1], [0, 0, 1, 1], [], []>} : vector<8x8xf32>, vector<8x8xf32>, vector<8x8xf32> -> vector<8x8xf32>
    %c0_20 = arith.constant 0 : index
    %c8 = arith.constant 8 : index
    %25 = vector.load %arg7[%c0_20, %c8] : memref<16x96xf32, #tpu.memory_space<vmem>>, vector<8x8xf32>
    %c0_21 = arith.constant 0 : index
    %c40 = arith.constant 40 : index
    %26 = vector.load %arg7[%c0_21, %c40] : memref<16x96xf32, #tpu.memory_space<vmem>>, vector<8x8xf32>
    %c0_22 = arith.constant 0 : index
    %c72 = arith.constant 72 : index
    %27 = vector.load %arg7[%c0_22, %c72] : memref<16x96xf32, #tpu.memory_space<vmem>>, vector<8x8xf32>
    %cst_23 = arith.constant dense<0.000000e+00> : vector<8x8xf32>
    %28 = tpu.matmul %25, %26, %cst_23 {dimension_numbers = #tpu.dot_dimension_numbers<[1], [1], [0], [0], [0, 0, 1, 0], [], []>} : vector<8x8xf32>, vector<8x8xf32>, vector<8x8xf32> -> vector<8x8xf32>
    %cst_24 = arith.constant dense<0xFF800000> : vector<8xf32>
    %29 = vector.multi_reduction <maximumf>, %28, %cst_24 [1] : vector<8x8xf32> to vector<8xf32>
    %30 = vector.shape_cast %29 : vector<8xf32> to vector<8x1xf32>
    %31 = vector.broadcast %30 : vector<8x1xf32> to vector<8x8xf32>
    %32 = arith.subf %28, %31 : vector<8x8xf32>
    %33 = math.exp %32 : vector<8x8xf32>
    %cst_25 = arith.constant dense<0.000000e+00> : vector<8xf32>
    %34 = vector.multi_reduction <add>, %33, %cst_25 [1] : vector<8x8xf32> to vector<8xf32>
    %35 = vector.shape_cast %34 : vector<8xf32> to vector<8x1xf32>
    %36 = tpu.reciprocal %35 : vector<8x1xf32> -> vector<8x1xf32>
    %37 = vector.broadcast %36 : vector<8x1xf32> to vector<8x8xf32>
    %38 = arith.mulf %33, %37 : vector<8x8xf32>
    %cst_26 = arith.constant dense<0.000000e+00> : vector<8x8xf32>
    %39 = tpu.matmul %38, %27, %cst_26 {dimension_numbers = #tpu.dot_dimension_numbers<[1], [0], [0], [1], [0, 0, 1, 1], [], []>} : vector<8x8xf32>, vector<8x8xf32>, vector<8x8xf32> -> vector<8x8xf32>
    %c0_27 = arith.constant 0 : index
    %c16 = arith.constant 16 : index
    %40 = vector.load %arg7[%c0_27, %c16] : memref<16x96xf32, #tpu.memory_space<vmem>>, vector<8x8xf32>
    %c0_28 = arith.constant 0 : index
    %c48 = arith.constant 48 : index
    %41 = vector.load %arg7[%c0_28, %c48] : memref<16x96xf32, #tpu.memory_space<vmem>>, vector<8x8xf32>
    %c0_29 = arith.constant 0 : index
    %c80 = arith.constant 80 : index
    %42 = vector.load %arg7[%c0_29, %c80] : memref<16x96xf32, #tpu.memory_space<vmem>>, vector<8x8xf32>
    %cst_30 = arith.constant dense<0.000000e+00> : vector<8x8xf32>
    %43 = tpu.matmul %40, %41, %cst_30 {dimension_numbers = #tpu.dot_dimension_numbers<[1], [1], [0], [0], [0, 0, 1, 0], [], []>} : vector<8x8xf32>, vector<8x8xf32>, vector<8x8xf32> -> vector<8x8xf32>
    %cst_31 = arith.constant dense<0xFF800000> : vector<8xf32>
    %44 = vector.multi_reduction <maximumf>, %43, %cst_31 [1] : vector<8x8xf32> to vector<8xf32>
    %45 = vector.shape_cast %44 : vector<8xf32> to vector<8x1xf32>
    %46 = vector.broadcast %45 : vector<8x1xf32> to vector<8x8xf32>
    %47 = arith.subf %43, %46 : vector<8x8xf32>
    %48 = math.exp %47 : vector<8x8xf32>
    %cst_32 = arith.constant dense<0.000000e+00> : vector<8xf32>
    %49 = vector.multi_reduction <add>, %48, %cst_32 [1] : vector<8x8xf32> to vector<8xf32>
    %50 = vector.shape_cast %49 : vector<8xf32> to vector<8x1xf32>
    %51 = tpu.reciprocal %50 : vector<8x1xf32> -> vector<8x1xf32>
    %52 = vector.broadcast %51 : vector<8x1xf32> to vector<8x8xf32>
    %53 = arith.mulf %48, %52 : vector<8x8xf32>
    %cst_33 = arith.constant dense<0.000000e+00> : vector<8x8xf32>
    %54 = tpu.matmul %53, %42, %cst_33 {dimension_numbers = #tpu.dot_dimension_numbers<[1], [0], [0], [1], [0, 0, 1, 1], [], []>} : vector<8x8xf32>, vector<8x8xf32>, vector<8x8xf32> -> vector<8x8xf32>
    %c0_34 = arith.constant 0 : index
    %c24 = arith.constant 24 : index
    %55 = vector.load %arg7[%c0_34, %c24] : memref<16x96xf32, #tpu.memory_space<vmem>>, vector<8x8xf32>
    %c0_35 = arith.constant 0 : index
    %c56 = arith.constant 56 : index
    %56 = vector.load %arg7[%c0_35, %c56] : memref<16x96xf32, #tpu.memory_space<vmem>>, vector<8x8xf32>
    %c0_36 = arith.constant 0 : index
    %c88 = arith.constant 88 : index
    %57 = vector.load %arg7[%c0_36, %c88] : memref<16x96xf32, #tpu.memory_space<vmem>>, vector<8x8xf32>
    %cst_37 = arith.constant dense<0.000000e+00> : vector<8x8xf32>
    %58 = tpu.matmul %55, %56, %cst_37 {dimension_numbers = #tpu.dot_dimension_numbers<[1], [1], [0], [0], [0, 0, 1, 0], [], []>} : vector<8x8xf32>, vector<8x8xf32>, vector<8x8xf32> -> vector<8x8xf32>
    %cst_38 = arith.constant dense<0xFF800000> : vector<8xf32>
    %59 = vector.multi_reduction <maximumf>, %58, %cst_38 [1] : vector<8x8xf32> to vector<8xf32>
    %60 = vector.shape_cast %59 : vector<8xf32> to vector<8x1xf32>
    %61 = vector.broadcast %60 : vector<8x1xf32> to vector<8x8xf32>
    %62 = arith.subf %58, %61 : vector<8x8xf32>
    %63 = math.exp %62 : vector<8x8xf32>
    %cst_39 = arith.constant dense<0.000000e+00> : vector<8xf32>
    %64 = vector.multi_reduction <add>, %63, %cst_39 [1] : vector<8x8xf32> to vector<8xf32>
    %65 = vector.shape_cast %64 : vector<8xf32> to vector<8x1xf32>
    %66 = tpu.reciprocal %65 : vector<8x1xf32> -> vector<8x1xf32>
    %67 = vector.broadcast %66 : vector<8x1xf32> to vector<8x8xf32>
    %68 = arith.mulf %63, %67 : vector<8x8xf32>
    %cst_40 = arith.constant dense<0.000000e+00> : vector<8x8xf32>
    %69 = tpu.matmul %68, %57, %cst_40 {dimension_numbers = #tpu.dot_dimension_numbers<[1], [0], [0], [1], [0, 0, 1, 1], [], []>} : vector<8x8xf32>, vector<8x8xf32>, vector<8x8xf32> -> vector<8x8xf32>
    %70 = tpu.concatenate %24, %39, %54, %69 in 1 : vector<8x8xf32>, vector<8x8xf32>, vector<8x8xf32>, vector<8x8xf32> -> vector<8x32xf32>
    %c8_41 = arith.constant 8 : index
    %c0_42 = arith.constant 0 : index
    %71 = vector.load %arg7[%c8_41, %c0_42] : memref<16x96xf32, #tpu.memory_space<vmem>>, vector<8x8xf32>
    %c8_43 = arith.constant 8 : index
    %c32_44 = arith.constant 32 : index
    %72 = vector.load %arg7[%c8_43, %c32_44] : memref<16x96xf32, #tpu.memory_space<vmem>>, vector<8x8xf32>
    %c8_45 = arith.constant 8 : index
    %c64_46 = arith.constant 64 : index
    %73 = vector.load %arg7[%c8_45, %c64_46] : memref<16x96xf32, #tpu.memory_space<vmem>>, vector<8x8xf32>
    %cst_47 = arith.constant dense<0.000000e+00> : vector<8x8xf32>
    %74 = tpu.matmul %71, %72, %cst_47 {dimension_numbers = #tpu.dot_dimension_numbers<[1], [1], [0], [0], [0, 0, 1, 0], [], []>} : vector<8x8xf32>, vector<8x8xf32>, vector<8x8xf32> -> vector<8x8xf32>
    %cst_48 = arith.constant dense<0xFF800000> : vector<8xf32>
    %75 = vector.multi_reduction <maximumf>, %74, %cst_48 [1] : vector<8x8xf32> to vector<8xf32>
    %76 = vector.shape_cast %75 : vector<8xf32> to vector<8x1xf32>
    %77 = vector.broadcast %76 : vector<8x1xf32> to vector<8x8xf32>
    %78 = arith.subf %74, %77 : vector<8x8xf32>
    %79 = math.exp %78 : vector<8x8xf32>
    %cst_49 = arith.constant dense<0.000000e+00> : vector<8xf32>
    %80 = vector.multi_reduction <add>, %79, %cst_49 [1] : vector<8x8xf32> to vector<8xf32>
    %81 = vector.shape_cast %80 : vector<8xf32> to vector<8x1xf32>
    %82 = tpu.reciprocal %81 : vector<8x1xf32> -> vector<8x1xf32>
    %83 = vector.broadcast %82 : vector<8x1xf32> to vector<8x8xf32>
    %84 = arith.mulf %79, %83 : vector<8x8xf32>
    %cst_50 = arith.constant dense<0.000000e+00> : vector<8x8xf32>
    %85 = tpu.matmul %84, %73, %cst_50 {dimension_numbers = #tpu.dot_dimension_numbers<[1], [0], [0], [1], [0, 0, 1, 1], [], []>} : vector<8x8xf32>, vector<8x8xf32>, vector<8x8xf32> -> vector<8x8xf32>
    %c8_51 = arith.constant 8 : index
    %c8_52 = arith.constant 8 : index
    %86 = vector.load %arg7[%c8_51, %c8_52] : memref<16x96xf32, #tpu.memory_space<vmem>>, vector<8x8xf32>
    %c8_53 = arith.constant 8 : index
    %c40_54 = arith.constant 40 : index
    %87 = vector.load %arg7[%c8_53, %c40_54] : memref<16x96xf32, #tpu.memory_space<vmem>>, vector<8x8xf32>
    %c8_55 = arith.constant 8 : index
    %c72_56 = arith.constant 72 : index
    %88 = vector.load %arg7[%c8_55, %c72_56] : memref<16x96xf32, #tpu.memory_space<vmem>>, vector<8x8xf32>
    %cst_57 = arith.constant dense<0.000000e+00> : vector<8x8xf32>
    %89 = tpu.matmul %86, %87, %cst_57 {dimension_numbers = #tpu.dot_dimension_numbers<[1], [1], [0], [0], [0, 0, 1, 0], [], []>} : vector<8x8xf32>, vector<8x8xf32>, vector<8x8xf32> -> vector<8x8xf32>
    %cst_58 = arith.constant dense<0xFF800000> : vector<8xf32>
    %90 = vector.multi_reduction <maximumf>, %89, %cst_58 [1] : vector<8x8xf32> to vector<8xf32>
    %91 = vector.shape_cast %90 : vector<8xf32> to vector<8x1xf32>
    %92 = vector.broadcast %91 : vector<8x1xf32> to vector<8x8xf32>
    %93 = arith.subf %89, %92 : vector<8x8xf32>
    %94 = math.exp %93 : vector<8x8xf32>
    %cst_59 = arith.constant dense<0.000000e+00> : vector<8xf32>
    %95 = vector.multi_reduction <add>, %94, %cst_59 [1] : vector<8x8xf32> to vector<8xf32>
    %96 = vector.shape_cast %95 : vector<8xf32> to vector<8x1xf32>
    %97 = tpu.reciprocal %96 : vector<8x1xf32> -> vector<8x1xf32>
    %98 = vector.broadcast %97 : vector<8x1xf32> to vector<8x8xf32>
    %99 = arith.mulf %94, %98 : vector<8x8xf32>
    %cst_60 = arith.constant dense<0.000000e+00> : vector<8x8xf32>
    %100 = tpu.matmul %99, %88, %cst_60 {dimension_numbers = #tpu.dot_dimension_numbers<[1], [0], [0], [1], [0, 0, 1, 1], [], []>} : vector<8x8xf32>, vector<8x8xf32>, vector<8x8xf32> -> vector<8x8xf32>
    %c8_61 = arith.constant 8 : index
    %c16_62 = arith.constant 16 : index
    %101 = vector.load %arg7[%c8_61, %c16_62] : memref<16x96xf32, #tpu.memory_space<vmem>>, vector<8x8xf32>
    %c8_63 = arith.constant 8 : index
    %c48_64 = arith.constant 48 : index
    %102 = vector.load %arg7[%c8_63, %c48_64] : memref<16x96xf32, #tpu.memory_space<vmem>>, vector<8x8xf32>
    %c8_65 = arith.constant 8 : index
    %c80_66 = arith.constant 80 : index
    %103 = vector.load %arg7[%c8_65, %c80_66] : memref<16x96xf32, #tpu.memory_space<vmem>>, vector<8x8xf32>
    %cst_67 = arith.constant dense<0.000000e+00> : vector<8x8xf32>
    %104 = tpu.matmul %101, %102, %cst_67 {dimension_numbers = #tpu.dot_dimension_numbers<[1], [1], [0], [0], [0, 0, 1, 0], [], []>} : vector<8x8xf32>, vector<8x8xf32>, vector<8x8xf32> -> vector<8x8xf32>
    %cst_68 = arith.constant dense<0xFF800000> : vector<8xf32>
    %105 = vector.multi_reduction <maximumf>, %104, %cst_68 [1] : vector<8x8xf32> to vector<8xf32>
    %106 = vector.shape_cast %105 : vector<8xf32> to vector<8x1xf32>
    %107 = vector.broadcast %106 : vector<8x1xf32> to vector<8x8xf32>
    %108 = arith.subf %104, %107 : vector<8x8xf32>
    %109 = math.exp %108 : vector<8x8xf32>
    %cst_69 = arith.constant dense<0.000000e+00> : vector<8xf32>
    %110 = vector.multi_reduction <add>, %109, %cst_69 [1] : vector<8x8xf32> to vector<8xf32>
    %111 = vector.shape_cast %110 : vector<8xf32> to vector<8x1xf32>
    %112 = tpu.reciprocal %111 : vector<8x1xf32> -> vector<8x1xf32>
    %113 = vector.broadcast %112 : vector<8x1xf32> to vector<8x8xf32>
    %114 = arith.mulf %109, %113 : vector<8x8xf32>
    %cst_70 = arith.constant dense<0.000000e+00> : vector<8x8xf32>
    %115 = tpu.matmul %114, %103, %cst_70 {dimension_numbers = #tpu.dot_dimension_numbers<[1], [0], [0], [1], [0, 0, 1, 1], [], []>} : vector<8x8xf32>, vector<8x8xf32>, vector<8x8xf32> -> vector<8x8xf32>
    %c8_71 = arith.constant 8 : index
    %c24_72 = arith.constant 24 : index
    %116 = vector.load %arg7[%c8_71, %c24_72] : memref<16x96xf32, #tpu.memory_space<vmem>>, vector<8x8xf32>
    %c8_73 = arith.constant 8 : index
    %c56_74 = arith.constant 56 : index
    %117 = vector.load %arg7[%c8_73, %c56_74] : memref<16x96xf32, #tpu.memory_space<vmem>>, vector<8x8xf32>
    %c8_75 = arith.constant 8 : index
    %c88_76 = arith.constant 88 : index
    %118 = vector.load %arg7[%c8_75, %c88_76] : memref<16x96xf32, #tpu.memory_space<vmem>>, vector<8x8xf32>
    %cst_77 = arith.constant dense<0.000000e+00> : vector<8x8xf32>
    %119 = tpu.matmul %116, %117, %cst_77 {dimension_numbers = #tpu.dot_dimension_numbers<[1], [1], [0], [0], [0, 0, 1, 0], [], []>} : vector<8x8xf32>, vector<8x8xf32>, vector<8x8xf32> -> vector<8x8xf32>
    %cst_78 = arith.constant dense<0xFF800000> : vector<8xf32>
    %120 = vector.multi_reduction <maximumf>, %119, %cst_78 [1] : vector<8x8xf32> to vector<8xf32>
    %121 = vector.shape_cast %120 : vector<8xf32> to vector<8x1xf32>
    %122 = vector.broadcast %121 : vector<8x1xf32> to vector<8x8xf32>
    %123 = arith.subf %119, %122 : vector<8x8xf32>
    %124 = math.exp %123 : vector<8x8xf32>
    %cst_79 = arith.constant dense<0.000000e+00> : vector<8xf32>
    %125 = vector.multi_reduction <add>, %124, %cst_79 [1] : vector<8x8xf32> to vector<8xf32>
    %126 = vector.shape_cast %125 : vector<8xf32> to vector<8x1xf32>
    %127 = tpu.reciprocal %126 : vector<8x1xf32> -> vector<8x1xf32>
    %128 = vector.broadcast %127 : vector<8x1xf32> to vector<8x8xf32>
    %129 = arith.mulf %124, %128 : vector<8x8xf32>
    %cst_80 = arith.constant dense<0.000000e+00> : vector<8x8xf32>
    %130 = tpu.matmul %129, %118, %cst_80 {dimension_numbers = #tpu.dot_dimension_numbers<[1], [0], [0], [1], [0, 0, 1, 1], [], []>} : vector<8x8xf32>, vector<8x8xf32>, vector<8x8xf32> -> vector<8x8xf32>
    %131 = tpu.concatenate %85, %100, %115, %130 in 1 : vector<8x8xf32>, vector<8x8xf32>, vector<8x8xf32>, vector<8x8xf32> -> vector<8x32xf32>
    %132 = tpu.concatenate %70, %131 in 0 : vector<8x32xf32>, vector<8x32xf32> -> vector<16x32xf32>
    %cst_81 = arith.constant dense<0.000000e+00> : vector<16x32xf32>
    %133 = tpu.matmul %132, %8, %cst_81 {dimension_numbers = #tpu.dot_dimension_numbers<[1], [0], [0], [1], [0, 0, 1, 1], [], []>} : vector<16x32xf32>, vector<32x32xf32>, vector<16x32xf32> -> vector<16x32xf32>
    %134 = vector.broadcast %9 : vector<1x32xf32> to vector<16x32xf32>
    %135 = arith.addf %133, %134 : vector<16x32xf32>
    %136 = vector.extract_strided_slice %135 {offsets = [0, 0], sizes = [1, 32], strides = [1, 1]} : vector<16x32xf32> to vector<1x32xf32>
    %137 = vector.extract_strided_slice %135 {offsets = [1, 0], sizes = [1, 32], strides = [1, 1]} : vector<16x32xf32> to vector<1x32xf32>
    %138 = vector.extract_strided_slice %135 {offsets = [2, 0], sizes = [1, 32], strides = [1, 1]} : vector<16x32xf32> to vector<1x32xf32>
    %139 = vector.extract_strided_slice %135 {offsets = [3, 0], sizes = [1, 32], strides = [1, 1]} : vector<16x32xf32> to vector<1x32xf32>
    %140 = vector.extract_strided_slice %135 {offsets = [4, 0], sizes = [1, 32], strides = [1, 1]} : vector<16x32xf32> to vector<1x32xf32>
    %141 = vector.extract_strided_slice %135 {offsets = [5, 0], sizes = [1, 32], strides = [1, 1]} : vector<16x32xf32> to vector<1x32xf32>
    %142 = vector.extract_strided_slice %135 {offsets = [6, 0], sizes = [1, 32], strides = [1, 1]} : vector<16x32xf32> to vector<1x32xf32>
    %143 = vector.extract_strided_slice %135 {offsets = [7, 0], sizes = [1, 32], strides = [1, 1]} : vector<16x32xf32> to vector<1x32xf32>
    %144 = tpu.concatenate %136, %137, %138, %139, %140, %141, %142, %143 in 1 : vector<1x32xf32>, vector<1x32xf32>, vector<1x32xf32>, vector<1x32xf32>, vector<1x32xf32>, vector<1x32xf32>, vector<1x32xf32>, vector<1x32xf32> -> vector<1x256xf32>
    %145 = vector.extract_strided_slice %135 {offsets = [8, 0], sizes = [1, 32], strides = [1, 1]} : vector<16x32xf32> to vector<1x32xf32>
    %146 = vector.extract_strided_slice %135 {offsets = [9, 0], sizes = [1, 32], strides = [1, 1]} : vector<16x32xf32> to vector<1x32xf32>
    %147 = vector.extract_strided_slice %135 {offsets = [10, 0], sizes = [1, 32], strides = [1, 1]} : vector<16x32xf32> to vector<1x32xf32>
    %148 = vector.extract_strided_slice %135 {offsets = [11, 0], sizes = [1, 32], strides = [1, 1]} : vector<16x32xf32> to vector<1x32xf32>
    %149 = vector.extract_strided_slice %135 {offsets = [12, 0], sizes = [1, 32], strides = [1, 1]} : vector<16x32xf32> to vector<1x32xf32>
    %150 = vector.extract_strided_slice %135 {offsets = [13, 0], sizes = [1, 32], strides = [1, 1]} : vector<16x32xf32> to vector<1x32xf32>
    %151 = vector.extract_strided_slice %135 {offsets = [14, 0], sizes = [1, 32], strides = [1, 1]} : vector<16x32xf32> to vector<1x32xf32>
    %152 = vector.extract_strided_slice %135 {offsets = [15, 0], sizes = [1, 32], strides = [1, 1]} : vector<16x32xf32> to vector<1x32xf32>
    %153 = tpu.concatenate %145, %146, %147, %148, %149, %150, %151, %152 in 1 : vector<1x32xf32>, vector<1x32xf32>, vector<1x32xf32>, vector<1x32xf32>, vector<1x32xf32>, vector<1x32xf32>, vector<1x32xf32>, vector<1x32xf32> -> vector<1x256xf32>
    %154 = tpu.concatenate %144, %153 in 0 : vector<1x256xf32>, vector<1x256xf32> -> vector<2x256xf32>
    %c0_82 = arith.constant 0 : index
    %c0_83 = arith.constant 0 : index
    %155 = vector.load %arg6[%c0_82, %c0_83] : memref<2x256xf32, #tpu.memory_space<vmem>>, vector<2x256xf32>
    tpu.vector_store %arg6[%c0_82, %c0_83], %154 {strides = array<i32>} : memref<2x256xf32, #tpu.memory_space<vmem>>, vector<2x256xf32>,
    return
  }
  func.func @transform_0(%arg0: i32) -> (i32, i32, i32) {
    %c0_i32 = arith.constant 0 : i32
    %c0_i32_0 = arith.constant 0 : i32
    %c0_i32_1 = arith.constant 0 : i32
    return %arg0, %c0_i32, %c0_i32_0 : i32, i32, i32
  }
  func.func @transform_1(%arg0: i32) -> (i32, i32) {
    %c0_i32 = arith.constant 0 : i32
    %c0_i32_0 = arith.constant 0 : i32
    %c0_i32_1 = arith.constant 0 : i32
    return %c0_i32, %c0_i32_0 : i32, i32
  }
  func.func @transform_2(%arg0: i32) -> (i32, i32) {
    %c0_i32 = arith.constant 0 : i32
    %c0_i32_0 = arith.constant 0 : i32
    %c0_i32_1 = arith.constant 0 : i32
    return %c0_i32, %c0_i32_0 : i32, i32
  }
  func.func @transform_3(%arg0: i32) -> (i32, i32) {
    %c0_i32 = arith.constant 0 : i32
    %c0_i32_0 = arith.constant 0 : i32
    %c0_i32_1 = arith.constant 0 : i32
    return %c0_i32, %c0_i32_0 : i32, i32
  }
  func.func @transform_4(%arg0: i32) -> (i32, i32) {
    %c0_i32 = arith.constant 0 : i32
    %c0_i32_0 = arith.constant 0 : i32
    %c0_i32_1 = arith.constant 0 : i32
    return %c0_i32, %c0_i32_0 : i32, i32
  }
  func.func @transform_5(%arg0: i32) -> (i32, i32) {
    %c0_i32 = arith.constant 0 : i32
    %c0_i32_0 = arith.constant 0 : i32
    return %arg0, %c0_i32 : i32, i32
  }
}

</mosaic_0001>

<bundles_post_ra>
// kernel: tpu_custom_call.1
= control target key start
LH: loop header
LB: loop body
LE: loop exit
PB: predicated region body
PF: predicated region fallthrough
CT: control target
= control target key end

     0   :  { %10 = vsyncpa [#allocation4], 0  ;;  %s2355_s0 = inlined_call_operand.hbm [shape: f32[2,8,32], index: 0, kind: input, shape index: {}]   ;;  %s2356_s1 = inlined_call_operand.hbm [shape: f32[32,96], index: 1, kind: input, shape index: {}]   ;;  %s2357_s2 = inlined_call_operand.vmem [shape: f32[1,96], index: 2, kind: input, shape index: {}]   ;;  %s2358_s3 = inlined_call_operand.hbm [shape: f32[32,32], index: 3, kind: input, shape index: {}]   ;;  %s2359_s4 = inlined_call_operand.vmem [shape: f32[1,32], index: 4, kind: input, shape index: {}]   ;;  %s2360_s5 = inlined_call_operand.hbm [shape: f32[2,256], index: 5, kind: output, shape index: {}]  }
   0x1   :  { %11 = vsyncpa [#allocation7], 0 }
   0x2   :  { %12 = vsyncpa [#allocation5], 0  ;;  %s2050_s18 = smov [#allocation6]   ;;  %s2051_s20 = smov [#allocation3]  }
   0x3   :  { %s30_s19 = sshll.u32 %s2050_s18, 4  ;;  %s18_s21 = sshll.u32 %s2051_s20, 4  ;;  %s31_s19 = int_to_ptr.vmem [resolvable:$true] %s30_s19  ;;  %s2102_s21 = int_to_ptr.vmem [resolvable:$true] %s18_s21 }
   0x4   :  { %s1956_s24 = scalar_lea.hbm %s2356_s1, 512 }
   0x5   :  { %p1957_p0 = scmp.ne.s32.totalorder %s2356_s1, %s1956_s24  ;;  %p1960_p1 = scmp.lt.u32.totalorder %s1956_s24, %s2356_s1 }
   0x7   :  { %p1962_p2 = pnand %p1960_p1, %p1957_p0 }
   0x9   :  { %1965 = shalt.err (!%p1962_p2)
}
   0xa   :  { %s1966_s29 = scalar_lea.vmem %s31_s19, 512  ;;  %p1971_p4 = scmp.lt.s32.totalorder %s31_s19, %s31_s19 }
   0xb   :  { %p1967_p3 = scmp.ne.s32.totalorder %s31_s19, %s1966_s29  ;;  %p1972_p5 = scmp.lt.s32.totalorder %s1966_s29, %s1966_s29 }
   0xd   :  { %p1973_p6 = por %p1972_p5, %p1971_p4 }
   0xf   :  { %p1974_p7 = pnand %p1973_p6, %p1967_p3 }
  0x11   :  { %1977 = shalt.err (!%p1974_p7)
}
  0x12   :  { %s2052_s30 = smov 128   ;;  %s2053_s6 = smov 8  }
  0x13   :  { %36 = dma.hbm_to_vmem [thread:$0]  %s2356_s1, 512, %s31_s19, [#allocation7], %s2052_s30, %s2052_s30, %s2053_s6  }
  0x14   :  { %s1978_s11 = scalar_lea.hbm %s2355_s0, 256 }
  0x15   :  { %p1979_p8 = scmp.ne.s32.totalorder %s2355_s0, %s1978_s11  ;;  %p1982_p9 = scmp.lt.u32.totalorder %s1978_s11, %s2355_s0 }
  0x17   :  { %p1984_p10 = pnand %p1982_p9, %p1979_p8 }
  0x19   :  { %1987 = shalt.err (!%p1984_p10)
}
  0x1a   :  { %s1988_s16 = scalar_lea.vmem %s2102_s21, 256  ;;  %p1993_p12 = scmp.lt.s32.totalorder %s2102_s21, %s2102_s21 }
  0x1b   :  { %p1989_p11 = scmp.ne.s32.totalorder %s2102_s21, %s1988_s16  ;;  %p1994_p13 = scmp.lt.s32.totalorder %s1988_s16, %s1988_s16 }
  0x1d   :  { %p1995_p0 = por %p1994_p13, %p1993_p12 }
  0x1f   :  { %p1996_p1 = pnand %p1995_p0, %p1989_p11 }
  0x21   :  { %1999 = shalt.err (!%p1996_p1)
}
  0x22   :  { %24 = dma.hbm_to_vmem [thread:$0]  %s2355_s0, 256, %s2102_s21, [#allocation4], %s2052_s30, %s2052_s30, %s2053_s6  }
  0x23   :  { %s2054_s18 = smov [#allocation8]   ;;  %s2000_s23 = scalar_lea.hbm %s2358_s3, 512 }
  0x24   :  { %s44_s19 = sshll.u32 %s2054_s18, 4  ;;  %p2001_p2 = scmp.ne.s32.totalorder %s2358_s3, %s2000_s23  ;;  %s45_s19 = int_to_ptr.vmem [resolvable:$true] %s44_s19 }
  0x25   :  { %p2004_p3 = scmp.lt.u32.totalorder %s2000_s23, %s2358_s3 }
  0x27   :  { %p2006_p4 = pnand %p2004_p3, %p2001_p2 }
  0x29   :  { %2009 = shalt.err (!%p2006_p4)
}
  0x2a   :  { %s2010_s28 = scalar_lea.vmem %s45_s19, 512  ;;  %p2015_p6 = scmp.lt.s32.totalorder %s45_s19, %s45_s19 }
  0x2b   :  { %p2011_p5 = scmp.ne.s32.totalorder %s45_s19, %s2010_s28  ;;  %p2016_p7 = scmp.lt.s32.totalorder %s2010_s28, %s2010_s28 }
  0x2d   :  { %p2017_p8 = por %p2016_p7, %p2015_p6 }
  0x2f   :  { %p2018_p9 = pnand %p2017_p8, %p2011_p5 }
  0x31   :  { %2021 = shalt.err (!%p2018_p9)
}
  0x32   :  { %50 = dma.hbm_to_vmem [thread:$0]  %s2358_s3, 512, %s45_s19, [#allocation7], %s2052_s30, %s2052_s30, %s2053_s6  }
  0x33   :  { %2044 = dma.done.wait [#allocation4], 256  }
  0x34   :  { %2045 = vsyncadd [#allocation4], 4294967040 }
  0x35   :  { %2046 = dma.done.wait [#allocation7], 1024  }
  0x36   :  { %2047 = vsyncadd [#allocation7], 4294966272  ;;  %vm75_vm0 = vcmask 261120   ;;  %v64_v0 = vld [vmem:[#allocation6] sm:$0xff]  ;;  %v65_v1 = vld [vmem:[#allocation6 + $0x8] sm:$0xff]  ;;  %v2055_v8 = vmov 0.0  }
  0x37   :  { %v66_v2 = vld [vmem:[#allocation6 + $0x10] sm:$0xff]  ;;  %v1886_v3 = vpack.c.bf16 %v65_v1, %v64_v0  ;;  %v67_v4 = vld [vmem:[#allocation6 + $0x18] sm:$0xff]  ;;  %1795 = vmatprep.subr.mxu1 %v2055_v8  ;;  %v1709_v9 = vld [vmem:[%s2357_s2] ss:$0 sm:$0xff]  ;;  %vm157_vm1 = vcmask 785408   ;;  %vm2056_vm2 = vmmov 0  }
  0x38   :  { %v62_v5 = vld [vmem:[#allocation3] sm:$0xff]  ;;  %v1890_v6 = vpack.c.bf16 %v67_v4, %v66_v2  ;;  %v63_v7 = vld [vmem:[#allocation3 + $0x8] sm:$0xff]  ;;  %1797 = vmatprep.mubr.msk.f32.mxu1 %vm2056_vm2, %v2055_v8  ;;  %s2057_s30 = smov 64   ;;  %s2058_s2 = smov 96   ;;  %vm169_vm3 = vcmask 64512   ;;  %vm839_vm4 = vcmask 130048  }
  0x39   :  { %1792 = vmatprep.mubr.msk.f32.mxu0 %vm75_vm0, %v62_v5  ;;  %1887 = vmatprep.subr.bf16.mxu0 %v1886_v3  ;;  %s2059_s7 = smov 88   ;;  %s2060_s8 = smov 120   ;;  %vm841_vm5 = vcmask 195584   ;;  %vm1633_vm6 = vcmask 523264   ;;  %vm1678_vm7 = vcmask 1040384  }
  0x3a   :  { %1889 = vmatpush3.bf16.msra.mxu0 %v1886_v3  ;;  %s2061_s9 = smov 80   ;;  %s2062_s10 = smov 112  }
  0x3b   :  { %1891 = vmatprep.subr.bf16.mxu0 %v1890_v6  ;;  %s2063_s11 = smov 104   ;;  %s2064_s12 = smov 72  }
  0x3c   :  { %s2065_s13 = smov 48   ;;  %s2066_s14 = smov 56  }
  0x3d   :  { %s2067_s15 = smov 40   ;;  %s2068_s16 = smov 16  }
  0x3e   :  { %1893 = vmatpush3.bf16.msra.mxu0 %v1890_v6  ;;  %s2069_s1 = smov 24   ;;  %s2070_s18 = smov 32  }
  0x3f   :  { %1815 = vmatprep.subr.mxu0 %v2055_v8 }
  0x41   :  { %1793 = vmatmul.mubr.msk.f32.vlgmr.msra.gmra.mrb[0].mxu0 %vm75_vm0, %v63_v7 }
  0x42   :  { %1817 = vmatprep.mubr.msk.f32.mxu0 %vm2056_vm2, %v2055_v8 }
 0x114   :  { %v1794_v10 = vpop.f32.mrb[0].mxu0 }
 0x115   :  { %v154_v11 = vadd.f32 %v1794_v10, %v1709_v9  ;;  %v148_v12 = vpop.f32.mrb[1].mxu0 }
 0x116   :  { %v149_v13 = vadd.f32 %v1709_v9, %v148_v12 }
 0x117   :  { %159 = vst.msk [vmem:[#allocation2 + $0x8] sm:$0xff] %vm157_vm1, %v154_v11 }
 0x118   :  { %158 = vst.msk [vmem:[#allocation2] sm:$0xff] %vm157_vm1, %v149_v13 }
 0x11e   :  { %v2197_v26 = vld [vmem:[#allocation2 + $0x8] sm:$0xff] }
 0x11f   :  { %v2167_v14 = vld [vmem:[#allocation2] sm:$0xff] }
 0x120   :  { %255 = vrot.lane.b32.xlu1 %v2167_v14, %s2057_s30  ;;  %167 = vrot.lane.b32.xlu0 %v2167_v14, %s2058_s2 }
 0x124   :  { %333 = vrot.lane.b32.xlu1 %v2167_v14, %s2059_s7 }
 0x128   :  { %331 = vrot.lane.b32.xlu1 %v2167_v14, %s2060_s8 }
 0x12c   :  { %498 = vrot.lane.b32.xlu1 %v2167_v14, %s2061_s9 }
 0x130   :  { %496 = vrot.lane.b32.xlu1 %v2167_v14, %s2062_s10 }
 0x134   :  { %661 = vrot.lane.b32.xlu1 %v2167_v14, %s2063_s11 }
 0x192   :  { %v256_v15 = vpop.permute.xlu1 %255  ;;  %v168_v16 = vpop.permute.xlu0 %167 }
 0x193   :  { %1796 = vmatpush3.xpose.msk.msra.mxu1 %vm169_vm3, %v168_v16 }
 0x194   :  { %1800 = vmatprep.subr.mxu1 %v2055_v8 }
 0x196   :  { %v334_v17 = vpop.permute.xlu1 %333  ;;  %1798 = vmatmul.mubr.msk.f32.vlgmr.msra.gmra.mrb[0].mxu1 %vm169_vm3, %v2167_v14 }
 0x197   :  { %1801 = vmatpush3.msra.mxu1 %v256_v15  ;;  %1802 = vmatprep.mubr.msk.f32.mxu1 %vm2056_vm2, %v2055_v8 }
 0x198   :  { %1805 = vmatprep.subr.mxu1 %v2055_v8 }
 0x19a   :  { %v332_v18 = vpop.permute.xlu1 %331 }
 0x19e   :  { %v499_v19 = vpop.permute.xlu1 %498 }
 0x19f   :  { %1816 = vmatpush3.xpose.msk.msra.mxu0 %vm169_vm3, %v499_v19 }
 0x1a0   :  { %1825 = vmatprep.subr.mxu0 %v2055_v8 }
 0x1a2   :  { %v497_v20 = vpop.permute.xlu1 %496 }
 0x1a3   :  { %1818 = vmatmul.mubr.msk.f32.vlgmr.msra.gmra.mrb[2].mxu0 %vm169_vm3, %v497_v20 }
 0x1a4   :  { %1827 = vmatprep.mubr.msk.f32.mxu0 %vm2056_vm2, %v2055_v8 }
 0x1a6   :  { %v662_v32 = vpop.permute.xlu1 %661 }
 0x269   :  { %v240_v21 = vpop.f32.mrb[0].mxu1 }
 0x26a   :  { %v1799_v22 = vpop.f32.mrb[1].mxu1  ;;  %v244_v23 = vsel %vm169_vm3, %v240_v21, -inf }
 0x26b   :  { %245 = vmax.xlane.f32.xlu0 %v244_v23 }
 0x276   :  { %v2194_v24 = vpop.f32.mrb[2].mxu0 }
 0x277   :  { %v1819_v25 = vpop.f32.mrb[3].mxu0  ;;  %v574_v27 = vsel %vm169_vm3, %v2194_v24, -inf }
 0x281   :  { %663 = vrot.lane.b32.xlu0 %v2167_v14, %s2064_s12 }
 0x285   :  { %1173 = vrot.lane.b32.xlu0 %v2197_v26, %s2062_s10 }
 0x289   :  { %1338 = vrot.lane.b32.xlu0 %v2197_v26, %s2063_s11 }
 0x2a8   :  { %575 = vmax.xlane.f32.xlu0 %v574_v27 }
 0x2f8   :  { %v246_v28 = vpop.xlane.xlu0 %245 }
 0x2f9   :  { %v247_v29 = vsub.f32 %v240_v21, %v246_v28 }
 0x2fb   :  { %v248_v30 = vmul.f32 1.442695, %v247_v29 }
 0x2fc   :  { %v664_v31 = vpop.permute.xlu0 %663 }
 0x2fd   :  { %1924 = vpow2.f32 %v248_v30  ;;  %1826 = vmatpush3.xpose.msk.msra.mxu0 %vm169_vm3, %v664_v31 }
 0x2fe   :  { %1835 = vmatprep.subr.mxu0 %v2055_v8 }
 0x300   :  { %1828 = vmatmul.mubr.msk.f32.vlgmr.msra.gmra.mrb[4].mxu0 %vm169_vm3, %v662_v32  ;;  %v1174_v42 = vpop.permute.xlu0 %1173 }
 0x301   :  { %1837 = vmatprep.mubr.msk.f32.mxu0 %vm2056_vm2, %v2055_v8 }
 0x304   :  { %v1339_v44 = vpop.permute.xlu0 %1338 }
 0x307   :  { %v1925_v33 = vpop.eup %1924 }
 0x308   :  { %v250_v34 = vsel %vm169_vm3, %v1925_v33, 0.0 }
 0x309   :  { %251 = vadd.xlane.f32.xlu1 %v250_v34 }
 0x31a   :  { %845 = vrot.lane.b32.xlu1 %v2197_v26, %s2058_s2 }
 0x31e   :  { %1010 = vrot.lane.b32.xlu1 %v2197_v26, %s2059_s7 }
 0x322   :  { %1008 = vrot.lane.b32.xlu1 %v2197_v26, %s2060_s8 }
 0x326   :  { %1175 = vrot.lane.b32.xlu1 %v2197_v26, %s2061_s9 }
 0x32a   :  { %1340 = vrot.lane.b32.xlu1 %v2197_v26, %s2064_s12 }
 0x335   :  { %v576_v48 = vpop.xlane.xlu0 %575 }
 0x336   :  { %v577_v50 = vsub.f32 %v2194_v24, %v576_v48 }
 0x338   :  { %v578_v54 = vmul.f32 1.442695, %v577_v50 }
 0x396   :  { %v252_v35 = vpop.xlane.xlu1 %251 }
 0x397   :  { %1926 = vrcp.f32 %v252_v35 }
 0x398   :  { %1928 = vpow2.f32 %v578_v54 }
 0x39a   :  { %v846_v36 = vpop.permute.xlu1 %845 }
 0x39b   :  { %1836 = vmatpush3.xpose.msk.msra.mxu0 %vm169_vm3, %v846_v36 }
 0x39c   :  { %1845 = vmatprep.subr.mxu0 %v2055_v8 }
 0x39e   :  { %v1011_v37 = vpop.permute.xlu1 %1010  ;;  %1838 = vmatmul.mubr.msk.f32.vlgmr.msra.gmra.mrb[6].mxu0 %vm169_vm3, %v2197_v26 }
 0x39f   :  { %1846 = vmatpush3.xpose.msk.msra.mxu0 %vm169_vm3, %v1011_v37  ;;  %1847 = vmatprep.mubr.msk.f32.mxu0 %vm2056_vm2, %v2055_v8 }
 0x3a0   :  { %1855 = vmatprep.subr.mxu0 %v2055_v8 }
 0x3a1   :  { %v1927_v38 = vpop.eup %1926 }
 0x3a2   :  { %v254_v39 = vmul.f32 %v1927_v38, %v1925_v33  ;;  %v1009_v40 = vpop.permute.xlu1 %1008  ;;  %v2252_v6 = vpop.eup %1928 }
 0x3a3   :  { %1848 = vmatmul.mubr.msk.f32.vlgmr.msra.gmra.mrb[8].mxu0 %vm169_vm3, %v1009_v40  ;;  %v580_v10 = vsel %vm169_vm3, %v2252_v6, 0.0 }
 0x3a4   :  { %1803 = vmatmul.mubr.msk.f32.vlgmr.msra.gmra.mrb[2].mxu1 %vm169_vm3, %v254_v39  ;;  %1857 = vmatprep.mubr.msk.f32.mxu0 %vm2056_vm2, %v2055_v8 }
 0x3a5   :  { %1806 = vmatpush3.xpose.msk.msra.mxu1 %vm169_vm3, %v334_v17  ;;  %1807 = vmatprep.mubr.msk.f32.mxu1 %vm2056_vm2, %v2055_v8 }
 0x3a6   :  { %v1176_v41 = vpop.permute.xlu1 %1175  ;;  %1810 = vmatprep.subr.mxu1 %v2055_v8 }
 0x3a7   :  { %1856 = vmatpush3.xpose.msk.msra.mxu0 %vm169_vm3, %v1176_v41 }
 0x3a8   :  { %1808 = vmatmul.mubr.msk.f32.vlgmr.msra.gmra.mrb[4].mxu1 %vm169_vm3, %v332_v18  ;;  %1865 = vmatprep.subr.mxu0 %v2055_v8 }
 0x3a9   :  { %1812 = vmatprep.mubr.msk.f32.mxu1 %vm2056_vm2, %v2055_v8 }
 0x3aa   :  { %v1341_v43 = vpop.permute.xlu1 %1340  ;;  %1858 = vmatmul.mubr.msk.f32.vlgmr.msra.gmra.mrb[10].mxu0 %vm169_vm3, %v1174_v42 }
 0x3ab   :  { %1866 = vmatpush3.xpose.msk.msra.mxu0 %vm169_vm3, %v1341_v43  ;;  %1867 = vmatprep.mubr.msk.f32.mxu0 %vm2056_vm2, %v2055_v8 }
 0x3ae   :  { %1868 = vmatmul.mubr.msk.f32.vlgmr.msra.gmra.mrb[12].mxu0 %vm169_vm3, %v1339_v44 }
 0x3d3   :  { %v735_v45 = vpop.f32.mrb[4].mxu0 }
 0x3d4   :  { %v1829_v46 = vpop.f32.mrb[5].mxu0  ;;  %v739_v47 = vsel %vm169_vm3, %v735_v45, -inf }
 0x3d5   :  { %740 = vmax.xlane.f32.xlu0 %v739_v47 }
 0x462   :  { %v741_v49 = vpop.xlane.xlu0 %740 }
 0x463   :  { %v742_v53 = vsub.f32 %v735_v45, %v741_v49 }
 0x465   :  { %v743_v56 = vmul.f32 1.442695, %v742_v53 }
 0x467   :  { %1930 = vpow2.f32 %v743_v56 }
 0x471   :  { %v917_v51 = vpop.f32.mrb[6].mxu0  ;;  %v2255_v9 = vpop.eup %1930 }
 0x472   :  { %v1839_v52 = vpop.f32.mrb[7].mxu0  ;;  %v921_v2 = vsel %vm169_vm3, %v917_v51, -inf  ;;  %v745_v11 = vsel %vm169_vm3, %v2255_v9, 0.0 }
 0x476   :  { %v1082_v55 = vpop.f32.mrb[8].mxu0 }
 0x477   :  { %v2246_v57 = vpop.f32.mrb[2].mxu1  ;;  %v1849_v58 = vpop.f32.mrb[9].mxu0  ;;  %v1086_v59 = vsel %vm169_vm3, %v1082_v55, -inf }
 0x478   :  { %1087 = vmax.xlane.f32.xlu0 %v1086_v59  ;;  %v1804_v60 = vpop.f32.mrb[3].mxu1 }
 0x47b   :  { %v405_v61 = vpop.f32.mrb[4].mxu1 }
 0x47c   :  { %v1809_v62 = vpop.f32.mrb[5].mxu1  ;;  %v409_v63 = vsel %vm169_vm3, %v405_v61, -inf }
 0x47d   :  { %v1247_v0 = vpop.f32.mrb[10].mxu0  ;;  %410 = vmax.xlane.f32.xlu1 %v409_v63 }
 0x47e   :  { %v1859_v1 = vpop.f32.mrb[11].mxu0  ;;  %v1251_v7 = vsel %vm169_vm3, %v1247_v0, -inf }
 0x481   :  { %v1412_v3 = vpop.f32.mrb[12].mxu0  ;;  %922 = vmax.xlane.f32.xlu1 %v921_v2 }
 0x482   :  { %v1869_v4 = vpop.f32.mrb[13].mxu0  ;;  %v1416_v5 = vsel %vm169_vm3, %v1412_v3, -inf }
 0x483   :  { %1417 = vmax.xlane.f32.xlu0 %v1416_v5  ;;  %v160_v4 = vld [vmem:[#allocation8] sm:$0xff]  ;;  %v161_v5 = vld [vmem:[#allocation8 + $0x8] sm:$0xff] }
 0x485   :  { %1252 = vmax.xlane.f32.xlu1 %v1251_v7  ;;  %v1894_v7 = vpack.c.bf16 %v161_v5, %v160_v4 }
 0x487   :  { %581 = vadd.xlane.f32.xlu0 %v580_v10  ;;  %1895 = vmatprep.subr.bf16.mxu0 %v1894_v7  ;;  %v162_v10 = vld [vmem:[#allocation8 + $0x10] sm:$0xff] }
 0x488   :  { %1897 = vmatpush3.bf16.msra.mxu0 %v1894_v7 }
 0x489   :  { %746 = vadd.xlane.f32.xlu1 %v745_v11  ;;  %v163_v11 = vld [vmem:[#allocation8 + $0x18] sm:$0xff] }
 0x505   :  { %v1088_v12 = vpop.xlane.xlu0 %1087 }
 0x506   :  { %v1089_v13 = vsub.f32 %v1082_v55, %v1088_v12  ;;  %v1898_v12 = vpack.c.bf16 %v163_v11, %v162_v10 }
 0x508   :  { %v1090_v15 = vmul.f32 1.442695, %v1089_v13  ;;  %1899 = vmatprep.subr.bf16.mxu0 %v1898_v12 }
 0x509   :  { %1901 = vmatpush3.bf16.msra.mxu0 %v1898_v12 }
 0x50a   :  { %1932 = vpow2.f32 %v1090_v15  ;;  %v411_v16 = vpop.xlane.xlu1 %410 }
 0x50b   :  { %v412_v35 = vsub.f32 %v405_v61, %v411_v16 }
 0x50d   :  { %v413_v36 = vmul.f32 1.442695, %v412_v35 }
 0x50e   :  { %v923_v17 = vpop.xlane.xlu1 %922 }
 0x50f   :  { %v924_v18 = vsub.f32 %v917_v51, %v923_v17 }
 0x510   :  { %v1418_v19 = vpop.xlane.xlu0 %1417 }
 0x511   :  { %v925_v20 = vmul.f32 1.442695, %v924_v18  ;;  %v1419_v21 = vsub.f32 %v1412_v3, %v1418_v19 }
 0x512   :  { %v1253_v22 = vpop.xlane.xlu1 %1252 }
 0x513   :  { %1934 = vpow2.f32 %v925_v20  ;;  %v1420_v23 = vmul.f32 1.442695, %v1419_v21  ;;  %v1254_v24 = vsub.f32 %v1247_v0, %v1253_v22 }
 0x514   :  { %v2261_v25 = vpop.eup %1932  ;;  %v582_v39 = vpop.xlane.xlu0 %581 }
 0x515   :  { %1936 = vpow2.f32 %v1420_v23  ;;  %v1255_v27 = vmul.f32 1.442695, %v1254_v24  ;;  %v1092_v28 = vsel %vm169_vm3, %v2261_v25, 0.0 }
 0x516   :  { %1093 = vadd.xlane.f32.xlu1 %v1092_v28  ;;  %v747_v43 = vpop.xlane.xlu1 %746 }
 0x517   :  { %1938 = vpow2.f32 %v1255_v27 }
 0x518   :  { %1940 = vpow2.f32 %v413_v36  ;;  %v1736_v36 = vld [vmem:[%s2359_s4] ss:$0 sm:$0xff]  ;;  %s2071_s4 = smov [#allocation9]  }
 0x519   :  { %s1699_s19 = sshll.u32 %s2071_s4, 4  ;;  %s1700_s19 = int_to_ptr.vmem [resolvable:$true] %s1699_s19 }
 0x51a   :  { %s2022_s20 = scalar_lea.vmem %s1700_s19, 64  ;;  %p2027_p11 = scmp.lt.s32.totalorder %s1700_s19, %s1700_s19 }
 0x51b   :  { %p2023_p10 = scmp.ne.s32.totalorder %s1700_s19, %s2022_s20  ;;  %p2028_p12 = scmp.lt.s32.totalorder %s2022_s20, %s2022_s20 }
 0x51d   :  { %v2265_v29 = vpop.eup %1934  ;;  %p2029_p13 = por %p2028_p12, %p2027_p11 }
 0x51e   :  { %v927_v30 = vsel %vm169_vm3, %v2265_v29, 0.0 }
 0x51f   :  { %v2269_v31 = vpop.eup %1936  ;;  %928 = vadd.xlane.f32.xlu0 %v927_v30  ;;  %p2030_p0 = pnand %p2029_p13, %p2023_p10 }
 0x520   :  { %v1422_v32 = vsel %vm169_vm3, %v2269_v31, 0.0 }
 0x521   :  { %v2273_v33 = vpop.eup %1938  ;;  %1423 = vadd.xlane.f32.xlu1 %v1422_v32 }
 0x522   :  { %v1257_v34 = vsel %vm169_vm3, %v2273_v33, 0.0  ;;  %v1941_v37 = vpop.eup %1940 }
 0x523   :  { %1258 = vadd.xlane.f32.xlu0 %v1257_v34  ;;  %v415_v38 = vsel %vm169_vm3, %v1941_v37, 0.0 }
 0x532   :  { %585 = vrot.lane.b32.xlu1 %v2167_v14, %s2065_s13 }
 0x539   :  { %420 = vrot.lane.b32.xlu0 %v2167_v14, %s2066_s14 }
 0x53d   :  { %932 = vrot.lane.b32.xlu0 %v2197_v26, %s2057_s30 }
 0x541   :  { %1262 = vrot.lane.b32.xlu0 %v2197_v26, %s2065_s13 }
 0x556   :  { %416 = vadd.xlane.f32.xlu1 %v415_v38 }
 0x567   :  { %750 = vrot.lane.b32.xlu1 %v2167_v14, %s2067_s15 }
 0x56b   :  { %1097 = vrot.lane.b32.xlu1 %v2197_v26, %s2066_s14 }
 0x56f   :  { %1427 = vrot.lane.b32.xlu1 %v2197_v26, %s2067_s15 }
 0x5a3   :  { %v1094_v44 = vpop.xlane.xlu1 %1093 }
 0x5ac   :  { %v929_v40 = vpop.xlane.xlu0 %928 }
 0x5ae   :  { %v1424_v45 = vpop.xlane.xlu1 %1423 }
 0x5b0   :  { %v1259_v41 = vpop.xlane.xlu0 %1258 }
 0x5b2   :  { %v586_v46 = vpop.permute.xlu1 %585 }
 0x5b4   :  { %v421_v42 = vpop.permute.xlu0 %420 }
 0x5b5   :  { %1811 = vmatpush3.msra.mxu1 %v421_v42 }
 0x5b6   :  { %1820 = vmatprep.subr.mxu1 %v2055_v8 }
 0x5b8   :  { %v933_v54 = vpop.permute.xlu0 %932 }
 0x5bc   :  { %v1263_v61 = vpop.permute.xlu0 %1262 }
 0x5e3   :  { %v417_v47 = vpop.xlane.xlu1 %416 }
 0x5e4   :  { %1942 = vrcp.f32 %v417_v47 }
 0x5e5   :  { %1944 = vrcp.f32 %v582_v39 }
 0x5e6   :  { %1946 = vrcp.f32 %v747_v43 }
 0x5e7   :  { %1948 = vrcp.f32 %v929_v40  ;;  %v751_v51 = vpop.permute.xlu1 %750 }
 0x5e8   :  { %1950 = vrcp.f32 %v1094_v44 }
 0x5e9   :  { %1952 = vrcp.f32 %v1259_v41 }
 0x5ea   :  { %1954 = vrcp.f32 %v1424_v45 }
 0x5eb   :  { %v1098_v58 = vpop.permute.xlu1 %1097 }
 0x5ee   :  { %v1943_v14 = vpop.eup %1942 }
 0x5ef   :  { %v419_v48 = vmul.f32 %v1943_v14, %v1941_v37  ;;  %v1945_v49 = vpop.eup %1944  ;;  %v1428_v0 = vpop.permute.xlu1 %1427 }
 0x5f0   :  { %v584_v26 = vmul.f32 %v1945_v49, %v2252_v6  ;;  %v1947_v50 = vpop.eup %1946 }
 0x5f1   :  { %1813 = vmatmul.mubr.msk.f32.vlgmr.msra.gmra.mrb[6].mxu1 %vm169_vm3, %v419_v48  ;;  %v749_v52 = vmul.f32 %v1947_v50, %v2255_v9  ;;  %v1949_v53 = vpop.eup %1948 }
 0x5f2   :  { %1821 = vmatpush3.msra.mxu1 %v586_v46  ;;  %1822 = vmatprep.mubr.msk.f32.mxu1 %vm2056_vm2, %v2055_v8  ;;  %v931_v55 = vmul.f32 %v1949_v53, %v2265_v29  ;;  %v1951_v56 = vpop.eup %1950 }
 0x5f3   :  { %1830 = vmatprep.subr.mxu1 %v2055_v8  ;;  %v1096_v59 = vmul.f32 %v1951_v56, %v2261_v25  ;;  %v1953_v60 = vpop.eup %1952 }
 0x5f4   :  { %v1261_v62 = vmul.f32 %v1953_v60, %v2273_v33  ;;  %v1955_v63 = vpop.eup %1954 }
 0x5f5   :  { %1823 = vmatmul.mubr.msk.f32.vlgmr.msra.gmra.mrb[8].mxu1 %vm169_vm3, %v584_v26  ;;  %v1426_v1 = vmul.f32 %v1955_v63, %v2269_v31 }
 0x5f6   :  { %1831 = vmatpush3.msra.mxu1 %v751_v51  ;;  %1832 = vmatprep.mubr.msk.f32.mxu1 %vm2056_vm2, %v2055_v8 }
 0x5f7   :  { %1840 = vmatprep.subr.mxu1 %v2055_v8 }
 0x5f9   :  { %1833 = vmatmul.mubr.msk.f32.vlgmr.msra.gmra.mrb[10].mxu1 %vm169_vm3, %v749_v52 }
 0x5fa   :  { %1841 = vmatpush3.msra.mxu1 %v933_v54  ;;  %1842 = vmatprep.mubr.msk.f32.mxu1 %vm2056_vm2, %v2055_v8 }
 0x5fb   :  { %1850 = vmatprep.subr.mxu1 %v2055_v8 }
 0x5fd   :  { %1843 = vmatmul.mubr.msk.f32.vlgmr.msra.gmra.mrb[12].mxu1 %vm169_vm3, %v931_v55 }
 0x5fe   :  { %1851 = vmatpush3.msra.mxu1 %v1098_v58  ;;  %1852 = vmatprep.mubr.msk.f32.mxu1 %vm2056_vm2, %v2055_v8 }
 0x5ff   :  { %1860 = vmatprep.subr.mxu1 %v2055_v8 }
 0x601   :  { %1853 = vmatmul.mubr.msk.f32.vlgmr.msra.gmra.mrb[14].mxu1 %vm169_vm3, %v1096_v59 }
 0x602   :  { %1861 = vmatpush3.msra.mxu1 %v1263_v61  ;;  %1862 = vmatprep.mubr.msk.f32.mxu1 %vm2056_vm2, %v2055_v8 }
 0x603   :  { %1870 = vmatprep.subr.mxu1 %v2055_v8 }
 0x605   :  { %1863 = vmatmul.mubr.msk.f32.vlgmr.msra.gmra.mrb[16].mxu1 %vm169_vm3, %v1261_v62 }
 0x606   :  { %1871 = vmatpush3.msra.mxu1 %v1428_v0  ;;  %1872 = vmatprep.mubr.msk.f32.mxu1 %vm2056_vm2, %v2055_v8 }
 0x609   :  { %1873 = vmatmul.mubr.msk.f32.vlgmr.msra.gmra.mrb[18].mxu1 %vm169_vm3, %v1426_v1 }
 0x6c4   :  { %v492_v2 = vpop.f32.mrb[6].mxu1 }
 0x6c5   :  { %827 = vrot.lane.b32.xlu0 %v492_v2, %s2053_s6  ;;  %v1814_v3 = vpop.f32.mrb[7].mxu1 }
 0x6c8   :  { %v657_v6 = vpop.f32.mrb[8].mxu1 }
 0x6c9   :  { %831 = vrot.lane.b32.xlu1 %v657_v6, %s2068_s16  ;;  %v1824_v9 = vpop.f32.mrb[9].mxu1 }
 0x6cc   :  { %v822_v8 = vpop.f32.mrb[10].mxu1 }
 0x6cd   :  { %835 = vrot.lane.b32.xlu1 %v822_v8, %s2069_s1  ;;  %v1834_v13 = vpop.f32.mrb[11].mxu1 }
 0x6d0   :  { %v1004_v15 = vpop.f32.mrb[12].mxu1 }
 0x6d1   :  { %v1844_v16 = vpop.f32.mrb[13].mxu1 }
 0x6d4   :  { %v1169_v17 = vpop.f32.mrb[14].mxu1 }
 0x6d5   :  { %1504 = vrot.lane.b32.xlu0 %v1169_v17, %s2053_s6  ;;  %v1854_v18 = vpop.f32.mrb[15].mxu1 }
 0x6d8   :  { %v1334_v19 = vpop.f32.mrb[16].mxu1 }
 0x6d9   :  { %1508 = vrot.lane.b32.xlu0 %v1334_v19, %s2068_s16  ;;  %v1864_v20 = vpop.f32.mrb[17].mxu1 }
 0x6dc   :  { %v1499_v21 = vpop.f32.mrb[18].mxu1 }
 0x6dd   :  { %1512 = vrot.lane.b32.xlu1 %v1499_v21, %s2069_s1  ;;  %v1874_v22 = vpop.f32.mrb[19].mxu1 }
 0x737   :  { %v828_v23 = vpop.permute.xlu0 %827 }
 0x738   :  { %v838_v25 = vsel %vm169_vm3, %v2246_v57, %v828_v23 }
 0x73b   :  { %v832_v24 = vpop.permute.xlu1 %831 }
 0x73c   :  { %v840_v27 = vsel %vm839_vm4, %v838_v25, %v832_v24 }
 0x73f   :  { %v836_v28 = vpop.permute.xlu1 %835 }
 0x740   :  { %v842_v29 = vsel %vm841_vm5, %v840_v27, %v836_v28 }
 0x741   :  { %1883 = vmatprep.mubr.msk.f32.mxu0 %vm75_vm0, %v842_v29 }
 0x747   :  { %v1505_v30 = vpop.permute.xlu0 %1504 }
 0x748   :  { %v1515_v32 = vsel %vm169_vm3, %v1004_v15, %v1505_v30 }
 0x74b   :  { %v1509_v31 = vpop.permute.xlu0 %1508 }
 0x74c   :  { %v1516_v33 = vsel %vm839_vm4, %v1515_v32, %v1509_v31 }
 0x74f   :  { %v1513_v34 = vpop.permute.xlu1 %1512 }
 0x750   :  { %v1517_v35 = vsel %vm841_vm5, %v1516_v33, %v1513_v34 }
 0x751   :  { %1884 = vmatmul.mubr.msk.f32.vlgmr.msra.gmra.mrb[14].mxu0 %vm75_vm0, %v1517_v35 }
 0x824   :  { %v1885_v37 = vpop.f32.mrb[14].mxu0 }
 0x825   :  { %v1602_v57 = vadd.f32 %v1885_v37, %v1736_v36  ;;  %v1596_v38 = vpop.f32.mrb[15].mxu0 }
 0x826   :  { %v1597_v41 = vadd.f32 %v1736_v36, %v1596_v38 }
 0x827   :  { %v1644_v39 = vrot.slane %v1602_v57, 2  ;;  %v1640_v40 = vrot.slane %v1602_v57, 1  ;;  %v1654_v42 = vrot.slane %v1602_v57, 5  ;;  %v1648_v43 = vrot.slane %v1602_v57, 3 }
 0x828   :  { %v1610_v44 = vrot.slane %v1597_v41, 2  ;;  %v1606_v45 = vrot.slane %v1597_v41, 1  ;;  %v1620_v46 = vrot.slane %v1597_v41, 5  ;;  %v1614_v47 = vrot.slane %v1597_v41, 3 }
 0x829   :  { %1645 = vrot.lane.b32.xlu1 %v1644_v39, %s2057_s30  ;;  %1641 = vrot.lane.b32.xlu0 %v1640_v40, %s2070_s18  ;;  %v1628_v14 = vrot.slane %v1597_v41, 7  ;;  %v1624_v48 = vrot.slane %v1597_v41, 6  ;;  %v1662_v49 = vrot.slane %v1602_v57, 7  ;;  %v1658_v26 = vrot.slane %v1602_v57, 6 }
 0x82a   :  { %v1652_v62 = vrot.slane %v1602_v57, 4  ;;  %v1618_v0 = vrot.slane %v1597_v41, 4 }
 0x82d   :  { %1655 = vrot.lane.b32.xlu1 %v1654_v42, %s2070_s18  ;;  %1649 = vrot.lane.b32.xlu0 %v1648_v43, %s2058_s2 }
 0x831   :  { %1611 = vrot.lane.b32.xlu1 %v1610_v44, %s2057_s30  ;;  %1607 = vrot.lane.b32.xlu0 %v1606_v45, %s2070_s18 }
 0x835   :  { %1621 = vrot.lane.b32.xlu1 %v1620_v46, %s2070_s18  ;;  %1615 = vrot.lane.b32.xlu0 %v1614_v47, %s2058_s2 }
 0x839   :  { %1629 = vrot.lane.b32.xlu1 %v1628_v14, %s2058_s2  ;;  %1625 = vrot.lane.b32.xlu0 %v1624_v48, %s2057_s30 }
 0x83d   :  { %1663 = vrot.lane.b32.xlu1 %v1662_v49, %s2058_s2  ;;  %1659 = vrot.lane.b32.xlu0 %v1658_v26, %s2057_s30 }
 0x89b   :  { %v1646_v50 = vpop.permute.xlu1 %1645  ;;  %v1642_v51 = vpop.permute.xlu0 %1641 }
 0x89c   :  { %v1666_v59 = vsel %vm75_vm0, %v1602_v57, %v1642_v51 }
 0x89d   :  { %v1667_v1 = vsel %vm1633_vm6, %v1666_v59, %v1646_v50 }
 0x89f   :  { %v1656_v52 = vpop.permute.xlu1 %1655  ;;  %v1650_v53 = vpop.permute.xlu0 %1649 }
 0x8a0   :  { %v1669_v2 = vsel %vm75_vm0, %v1652_v62, %v1656_v52  ;;  %v1668_v3 = vsel %vm157_vm1, %v1667_v1, %v1650_v53 }
 0x8a1   :  { %v1674_v12 = vrot.slane %v1668_v3, 7 }
 0x8a3   :  { %v1612_v54 = vpop.permute.xlu1 %1611  ;;  %v1608_v55 = vpop.permute.xlu0 %1607 }
 0x8a4   :  { %v1632_v63 = vsel %vm75_vm0, %v1597_v41, %v1608_v55 }
 0x8a5   :  { %v1634_v7 = vsel %vm1633_vm6, %v1632_v63, %v1612_v54 }
 0x8a7   :  { %v1622_v56 = vpop.permute.xlu1 %1621  ;;  %v1616_v58 = vpop.permute.xlu0 %1615 }
 0x8a8   :  { %v1636_v4 = vsel %vm75_vm0, %v1618_v0, %v1622_v56  ;;  %v1635_v11 = vsel %vm157_vm1, %v1634_v7, %v1616_v58 }
 0x8a9   :  { %v1679_v16 = vsel %vm1678_vm7, %v1635_v11, %v1674_v12 }
 0x8ab   :  { %v1630_v60 = vpop.permute.xlu1 %1629  ;;  %v1626_v61 = vpop.permute.xlu0 %1625 }
 0x8ac   :  { %v1637_v9 = vsel %vm1633_vm6, %v1636_v4, %v1626_v61 }
 0x8ad   :  { %v1638_v15 = vsel %vm157_vm1, %v1637_v9, %v1630_v60 }
 0x8af   :  { %v1664_v5 = vpop.permute.xlu1 %1663  ;;  %v1660_v6 = vpop.permute.xlu0 %1659 }
 0x8b0   :  { %v1670_v10 = vsel %vm1633_vm6, %v1669_v2, %v1660_v6 }
 0x8b1   :  { %v1671_v8 = vsel %vm157_vm1, %v1670_v10, %v1664_v5 }
 0x8b2   :  { %v1675_v13 = vrot.slane %v1671_v8, 7 }
 0x8b4   :  { %v1680_v17 = vsel %vm1678_vm7, %v1638_v15, %v1675_v13 }
 0x8b5   :  { %v1683_v18 = vcombine.low %v1679_v16, %v1680_v17 }
 0x8b7   :  { %1739 = vst.sshfl [vmem:[#allocation9] sm:$0x33 pattern:$0x76325410] %v1683_v18 }
 0x8b8   :  { %2033 = shalt.err (!%p2030_p0)
}
 0x8b9   :  { %s2034_s24 = scalar_lea.hbm %s2360_s5, 64 }
 0x8ba   :  { %p2035_p1 = scmp.ne.s32.totalorder %s2360_s5, %s2034_s24  ;;  %p2038_p2 = scmp.lt.u32.totalorder %s2034_s24, %s2360_s5 }
 0x8bc   :  { %p2040_p3 = pnand %p2038_p2, %p2035_p1 }
 0x8be   :  { %2043 = shalt.err (!%p2040_p3)
}
 0x8bf   :  { %1702 = dma.vmem_to_hbm [thread:$0]  %s1700_s19, 64, %s2360_s5, [#allocation5]  }
 0x8c0   :  { %2048 = dma.done.wait [#allocation5], 64  }
 0x8c1   :  { %2049 = vsyncadd [#allocation5], 4294967232 }
 0x8c2   :  { %1706 = vsyncpa [#allocation4], 1 }
 0x8c3   :  { %1707 = vsyncpa [#allocation7], 1 }
 0x8c4   :  { %1708 = vsyncpa [#allocation5], 1 }

</bundles_post_ra>
